<compile_context>
chip_gen: v7x
topology: tpu7x:2x2x1
jax: 0.10.0
libtpu: 0.0.40
codegen_flags: <defaults>
</compile_context>

<pallas_src>
import functools

import jax
import jax.numpy as jnp
from jax import lax
from jax.experimental import pallas as pl
from jax.experimental.pallas import tpu as pltpu


LANES = 128  # lane width of the packed weight/bias slab


def _ru(x, m):
    """Round x up to a multiple of m."""
    return (x + m - 1) // m * m


# ----------------------------- Pallas kernel -------------------------------
def critic_kernel(x_ref, w_ref, out_ref, *,
                  kin, fcs1, fc2, r_w2s, r_w3, r_b1, r_b2, r_b3):
    """One batch tile.

    x_ref : (tm, kin)   concatenated [state, action] rows
    w_ref : (rows, 128) packed slab: Wpack | W2s | w3 row | b1 | b2 | b3
    out_ref: (1, tm)    lane-dense Q row for this tile
    """
    hout = fcs1 + fc2
    x = x_ref[...]                                            # (tm, kin)

    # Fused layer 1 + action-half of layer 2 via block-diagonal Wpack.
    #   y0[:, :fcs1]     = state  @ W1^T
    #   y0[:, fcs1:hout] = action @ W2a
    y0 = jnp.dot(x, w_ref[0:kin, 0:hout],
                 preferred_element_type=jnp.float32)          # (tm, hout)

    b1 = w_ref[r_b1:r_b1 + 1, 0:fcs1]                         # (1, fcs1)
    xs = jnp.maximum(y0[:, 0:fcs1] + b1, 0.0)                 # (tm, fcs1)

    # Layer 2 (state half) + action half (already in y0) + bias, relu.
    b2 = w_ref[r_b2:r_b2 + 1, 0:fc2]                          # (1, fc2)
    h = jnp.dot(xs, w_ref[r_w2s:r_w2s + fcs1, 0:fc2],
                preferred_element_type=jnp.float32)           # (tm, fc2)
    h = jnp.maximum(h + y0[:, fcs1:hout] + b2, 0.0)           # (tm, fc2)

    # Layer 3, lane-dense: q[0, m] = sum_k w3[k] * h[m, k] + b3.
    w3row = w_ref[r_w3:r_w3 + 1, 0:fc2]                       # (1, fc2)
    q = lax.dot_general(w3row, h, (((1,), (1,)), ((), ())),
                        preferred_element_type=jnp.float32)   # (1, tm)
    out_ref[...] = q + w_ref[r_b3:r_b3 + 1, 0:1]              # broadcast b3


# --------------------- one-time parameter re-layout -------------------------
def prepare_critic_params(params):
    """Hoisted layout work (call ONCE):

      * transpose PyTorch (out, in) weights to (in, out),
      * build the block-diagonal Wpack (W1 top-left, W2_action bottom-right),
      * pack Wpack, W2_state, the w3 row and all biases into a single
        (8,128)-aligned f32 slab, with static row offsets recorded in `meta`.
    """
    w1, b1, w2, b2, w3, b3 = (jnp.asarray(params[k], jnp.float32)
                              for k in ("w1", "b1", "w2", "b2", "w3", "b3"))
    fcs1, state_size = w1.shape            # torch Linear weight: (out, in)
    fc2, in2 = w2.shape
    action_size = in2 - fcs1
    kin = state_size + action_size
    hout = fcs1 + fc2
    if hout > LANES or fc2 > LANES:
        raise ValueError("packed slab assumes fcs1_units + fc2_units <= 128")

    # Static row offsets inside the slab (8-row aligned sub-blocks).
    r_wpack = 0
    r_w2s = _ru(kin, 8)
    r_w3 = r_w2s + _ru(fcs1, 8)
    r_b1 = r_w3 + 1
    r_b2 = r_b1 + 1
    r_b3 = r_b2 + 1
    rows = _ru(r_b3 + 1, 8)

    w2t = w2.T                              # (fcs1 + action_size, fc2)
    slab = jnp.zeros((rows, LANES), jnp.float32)
    # Block-diagonal Wpack.
    slab = slab.at[r_wpack:r_wpack + state_size, 0:fcs1].set(w1.T)
    slab = slab.at[r_wpack + state_size:r_wpack + kin,
                   fcs1:hout].set(w2t[fcs1:, :])
    # W2 state half.
    slab = slab.at[r_w2s:r_w2s + fcs1, 0:fc2].set(w2t[:fcs1, :])
    # fc3 weight row + biases.
    slab = slab.at[r_w3, 0:fc2].set(w3[0])
    slab = slab.at[r_b1, 0:fcs1].set(b1)
    slab = slab.at[r_b2, 0:fc2].set(b2)
    slab = slab.at[r_b3, 0].set(b3[0])

    meta = dict(state_size=int(state_size), action_size=int(action_size),
                kin=int(kin), fcs1=int(fcs1), fc2=int(fc2),
                r_w2s=int(r_w2s), r_w3=int(r_w3),
                r_b1=int(r_b1), r_b2=int(r_b2), r_b3=int(r_b3))
    return dict(w=slab, meta=meta)


# --------------------------- grid-size heuristic ----------------------------
def _default_num_tiles(batch):
    """Single grid step on single-TC chips (v5e/v6e); 2 parallel tiles on
    dual-TC v7x when the batch is big enough to split."""
    if batch < 256:
        return 1
    try:
        kind = jax.devices()[0].device_kind.lower()
    except Exception:
        kind = ""
    return 2 if "v7" in kind else 1


# ------------------------------ forward calls --------------------------------
def critic_forward_batched(state, action, prep, *, num_tiles=None):
    """state: (B, state_size), action: (B, action_size) -> Q: (B, 1)."""
    meta = prep["meta"]
    B, state_size = state.shape
    action_size = action.shape[1]
    assert state_size == meta["state_size"] and action_size == meta["action_size"]
    kin, fcs1, fc2 = meta["kin"], meta["fcs1"], meta["fc2"]

    f32 = jnp.float32
    if state.dtype != f32:
        state = state.astype(f32)
    if action.dtype != f32:
        action = action.astype(f32)
    # Concat hoisted to the wrapper; the kernel sees one activation stream.
    x = jnp.concatenate([state, action], axis=1)              # (B, kin)

    if num_tiles is None:
        num_tiles = _default_num_tiles(B)
    if num_tiles > 1:
        tm = _ru(pl.cdiv(B, num_tiles), LANES)   # lane-dense output tiles
    else:
        tm = _ru(B, 8)                           # single step, sublane-aligned
    bp = tm * num_tiles
    if bp != B:
        # Padded rows produce relu(bias) garbage; harmless, sliced off below.
        x = jnp.pad(x, ((0, bp - B), (0, 0)))

    w = prep["w"]
    rows, cols = w.shape

    kernel = functools.partial(
        critic_kernel, kin=kin, fcs1=fcs1, fc2=fc2,
        r_w2s=meta["r_w2s"], r_w3=meta["r_w3"],
        r_b1=meta["r_b1"], r_b2=meta["r_b2"], r_b3=meta["r_b3"])

    flops = 2 * bp * (kin * (fcs1 + fc2) + fcs1 * fc2 + fc2)
    bytes_accessed = bp * (kin + 1) * 4 + rows * cols * 4

    q = pl.pallas_call(
        kernel,
        out_shape=jax.ShapeDtypeStruct((1, bp), f32),
        grid=(num_tiles,),
        in_specs=[
            # batch-tiled activations
            pl.BlockSpec((tm, kin), lambda i: (i, 0)),
            # single packed weight/bias slab, resident for every grid step
            pl.BlockSpec((rows, cols), lambda i: (0, 0)),
        ],
        # lane-dense output: batch along lanes, one row
        out_specs=pl.BlockSpec((1, tm), lambda i: (0, i)),
        compiler_params=pltpu.CompilerParams(
            dimension_semantics=("parallel",)),
        cost_estimate=pl.CostEstimate(
            flops=flops, transcendentals=0, bytes_accessed=bytes_accessed),
    )(x, w)

    # Free metadata reshape back to the (B, 1) PyTorch layout.
    return q[0, :B].reshape(B, 1)


def critic_forward(state, action, prep):
    """Unbatched path matching the PyTorch module exactly:
    state: (state_size,), action: (action_size,) -> (1,).
    (Internally padded to 8 rows to match the native (8,128) tiling.)"""
    q = critic_forward_batched(state.reshape(1, -1), action.reshape(1, -1),
                               prep, num_tiles=1)
    return q.reshape(1)


# ------------------------- deterministic param init ------------------------
def init_linear(key, in_features, out_features):
    """Mimic torch.nn.Linear default init: U(-1/sqrt(fan_in), 1/sqrt(fan_in))."""
    kw, kb = jax.random.split(key)
    bound = 1.0 / jnp.sqrt(jnp.float32(in_features))
    w = jax.random.uniform(kw, (out_features, in_features), jnp.float32,
                           minval=-bound, maxval=bound)
    b = jax.random.uniform(kb, (out_features,), jnp.float32,
                           minval=-bound, maxval=bound)
    return w, b


def init_critic_params(key, state_size, action_size,
                       fcs1_units=24, fc2_units=48):
    k1, k2, k3 = jax.random.split(key, 3)
    w1, b1 = init_linear(k1, state_size, fcs1_units)
    w2, b2 = init_linear(k2, fcs1_units + action_size, fc2_units)
    w3, b3 = init_linear(k3, fc2_units, 1)
    return dict(w1=w1, b1=b1, w2=w2, b2=b2, w3=w3, b3=b3)


# --------------------------- pure-JAX reference -----------------------------
def critic_reference(state, action, p):
    xs = jax.nn.relu(state @ p["w1"].T + p["b1"])
    x = jnp.concatenate([xs, action], axis=-1)
    x = jax.nn.relu(x @ p["w2"].T + p["b2"])
    return x @ p["w3"].T + p["b3"]


if __name__ == "__main__":
    state_size, action_size = 16, 4
    batch = 256
    key = jax.random.PRNGKey(0)
    kp, ks, ka = jax.random.split(key, 3)

    params = init_critic_params(kp, state_size, action_size)
    prep = prepare_critic_params(params)          # one-time layout hoist

    states = jax.random.normal(ks, (batch, state_size), jnp.float32)
    actions = jax.random.normal(ka, (batch, action_size), jnp.float32)

    # Keep prep (static ints + weight slab) out of the traced arguments.
    fwd = jax.jit(lambda s, a: critic_forward_batched(s, a, prep))
    q = fwd(states, actions)
    jax.block_until_ready(q)

    q_ref = critic_reference(states, actions, params)
    assert q.shape == (batch, 1)
    assert jnp.allclose(q, q_ref, atol=1e-4, rtol=1e-4)

    # Unbatched parity with the original (1-D input) PyTorch module semantics.
    q1 = critic_forward(states[0], actions[0], prep)
    jax.block_until_ready(q1)
    assert q1.shape == (1,)
    assert jnp.allclose(q1, q_ref[0], atol=1e-4, rtol=1e-4)

    print("KERNEL_OK")
</pallas_src>

<mosaic_0001>
module attributes {stable_mosaic.version = 11 : i64} {
  func.func @critic_kernel(%arg0: i32, %arg1: memref<256x20xf32, #tpu.memory_space<vmem>>, %arg2: memref<56x128xf32, #tpu.memory_space<vmem>>, %arg3: memref<1x256xf32, #tpu.memory_space<vmem>>) attributes {dimension_semantics = [#tpu.dimension_semantics<parallel>], iteration_bounds = array<i64: 1>, scalar_prefetch = 0 : i64, scratch_operands = 0 : i64, tpu.core_type = #tpu.core_type<tc>, window_params = [{transform_indices = @transform_0, window_bounds = array<i64: 256, 20>}, {pipeline_mode = #tpu.pipeline_mode<synchronous>, transform_indices = @transform_1, window_bounds = array<i64: 56, 128>}, {transform_indices = @transform_2, window_bounds = array<i64: 1, 256>}]} {
    %c0 = arith.constant 0 : index
    %c0_0 = arith.constant 0 : index
    %0 = vector.load %arg1[%c0, %c0_0] : memref<256x20xf32, #tpu.memory_space<vmem>>, vector<256x20xf32>
    %c0_1 = arith.constant 0 : index
    %c0_2 = arith.constant 0 : index
    %1 = vector.load %arg2[%c0_1, %c0_2] : memref<56x128xf32, #tpu.memory_space<vmem>>, vector<20x72xf32>
    %cst = arith.constant dense<0.000000e+00> : vector<256x72xf32>
    %2 = tpu.matmul %0, %1, %cst {dimension_numbers = #tpu.dot_dimension_numbers<[1], [0], [0], [1], [0, 0, 1, 1], [], []>} : vector<256x20xf32>, vector<20x72xf32>, vector<256x72xf32> -> vector<256x72xf32>
    %c49 = arith.constant 49 : index
    %c0_3 = arith.constant 0 : index
    %3 = vector.load %arg2[%c49, %c0_3] : memref<56x128xf32, #tpu.memory_space<vmem>>, vector<1x24xf32>
    %4 = vector.extract_strided_slice %2 {offsets = [0, 0], sizes = [256, 24], strides = [1, 1]} : vector<256x72xf32> to vector<256x24xf32>
    %5 = vector.broadcast %3 : vector<1x24xf32> to vector<256x24xf32>
    %6 = arith.addf %4, %5 : vector<256x24xf32>
    %cst_4 = arith.constant 0.000000e+00 : f32
    %7 = vector.broadcast %cst_4 : f32 to vector<256x24xf32>
    %8 = arith.maximumf %6, %7 : vector<256x24xf32>
    %c50 = arith.constant 50 : index
    %c0_5 = arith.constant 0 : index
    %9 = vector.load %arg2[%c50, %c0_5] : memref<56x128xf32, #tpu.memory_space<vmem>>, vector<1x48xf32>
    %c24 = arith.constant 24 : index
    %c0_6 = arith.constant 0 : index
    %10 = vector.load %arg2[%c24, %c0_6] : memref<56x128xf32, #tpu.memory_space<vmem>>, vector<24x48xf32>
    %cst_7 = arith.constant dense<0.000000e+00> : vector<256x48xf32>
    %11 = tpu.matmul %8, %10, %cst_7 {dimension_numbers = #tpu.dot_dimension_numbers<[1], [0], [0], [1], [0, 0, 1, 1], [], []>} : vector<256x24xf32>, vector<24x48xf32>, vector<256x48xf32> -> vector<256x48xf32>
    %12 = vector.extract_strided_slice %2 {offsets = [0, 24], sizes = [256, 48], strides = [1, 1]} : vector<256x72xf32> to vector<256x48xf32>
    %13 = arith.addf %11, %12 : vector<256x48xf32>
    %14 = vector.broadcast %9 : vector<1x48xf32> to vector<256x48xf32>
    %15 = arith.addf %13, %14 : vector<256x48xf32>
    %cst_8 = arith.constant 0.000000e+00 : f32
    %16 = vector.broadcast %cst_8 : f32 to vector<256x48xf32>
    %17 = arith.maximumf %15, %16 : vector<256x48xf32>
    %c48 = arith.constant 48 : index
    %c0_9 = arith.constant 0 : index
    %18 = vector.load %arg2[%c48, %c0_9] : memref<56x128xf32, #tpu.memory_space<vmem>>, vector<1x48xf32>
    %cst_10 = arith.constant dense<0.000000e+00> : vector<1x256xf32>
    %19 = tpu.matmul %18, %17, %cst_10 {dimension_numbers = #tpu.dot_dimension_numbers<[1], [1], [0], [0], [0, 0, 1, 0], [], []>} : vector<1x48xf32>, vector<256x48xf32>, vector<1x256xf32> -> vector<1x256xf32>
    %c51 = arith.constant 51 : index
    %c0_11 = arith.constant 0 : index
    %20 = vector.load %arg2[%c51, %c0_11] : memref<56x128xf32, #tpu.memory_space<vmem>>, vector<1x1xf32>
    %21 = vector.broadcast %20 : vector<1x1xf32> to vector<1x256xf32>
    %22 = arith.addf %19, %21 : vector<1x256xf32>
    %c0_12 = arith.constant 0 : index
    %c0_13 = arith.constant 0 : index
    %23 = vector.load %arg3[%c0_12, %c0_13] : memref<1x256xf32, #tpu.memory_space<vmem>>, vector<1x256xf32>
    tpu.vector_store %arg3[%c0_12, %c0_13], %22 {strides = array<i32>} : memref<1x256xf32, #tpu.memory_space<vmem>>, vector<1x256xf32>,
    return
  }
  func.func @transform_0(%arg0: i32) -> (i32, i32) {
    %c0_i32 = arith.constant 0 : i32
    %c0_i32_0 = arith.constant 0 : i32
    return %arg0, %c0_i32 : i32, i32
  }
  func.func @transform_1(%arg0: i32) -> (i32, i32) {
    %c0_i32 = arith.constant 0 : i32
    %c0_i32_0 = arith.constant 0 : i32
    %c0_i32_1 = arith.constant 0 : i32
    return %c0_i32, %c0_i32_0 : i32, i32
  }
  func.func @transform_2(%arg0: i32) -> (i32, i32) {
    %c0_i32 = arith.constant 0 : i32
    %c0_i32_0 = arith.constant 0 : i32
    return %c0_i32, %arg0 : i32, i32
  }
}

</mosaic_0001>

<bundles_post_ra>
// kernel: _lambda_.1
= control target key start
LH: loop header
LB: loop body
LE: loop exit
PB: predicated region body
PF: predicated region fallthrough
CT: control target
= control target key end

     0   :  { %vm47_vm0 = vcmask 162816   ;;  %vm144_vm1 = vcmask 1043456   ;;  %s2069_s0 = inlined_call_operand.vmem [shape: f32[256,20], index: 0, kind: input, shape index: {}]   ;;  %s2070_s1 = inlined_call_operand.vmem [shape: f32[56,128], index: 1, kind: input, shape index: {}]   ;;  %s2071_s2 = inlined_call_operand.hbm [shape: f32[1,256], index: 2, kind: output, shape index: {}]  }
   0x1   :  { %v44_v0 = vld [vmem:[%s2070_s1] sm:$0xff]  ;;  %v45_v1 = vld [vmem:[%s2070_s1 + $0x8] sm:$0xff]  ;;  %v46_v4 = vld [vmem:[%s2070_s1 + $0x10] sm:$0xf] }
   0x2   :  { %v1491_v2 = vpack.c.bf16 %v45_v1, %v44_v0  ;;  %v12_v3 = vld [vmem:[%s2069_s0] sm:$0xff]  ;;  %v13_v5 = vld [vmem:[%s2069_s0 + $0x8] sm:$0xff]  ;;  %v14_v6 = vld [vmem:[%s2069_s0 + $0x10] sm:$0xff] }
   0x3   :  { %1389 = vmatprep.mubr.msk.f32.mxu0 %vm47_vm0, %v12_v3  ;;  %v15_v7 = vld [vmem:[%s2069_s0 + $0x18] sm:$0xff]  ;;  %v16_v8 = vld [vmem:[%s2069_s0 + $0x20] sm:$0xff] }
   0x4   :  { %1492 = vmatprep.subr.bf16.mxu0 %v1491_v2 }
   0x5   :  { %1494 = vmatpush3.bf16.msra.mxu0 %v1491_v2 }
   0x6   :  { %1387 = vmatprep.subr.msk.mxu0 %vm144_vm1, %v46_v4 }
   0x9   :  { %1388 = vmatpush3.msk.msra.mxu0 %vm144_vm1, %v46_v4 }
   0xa   :  { %1390 = vmatmul.mubr.msk.f32.vlgmr.msra.gmra.mrb[0].mxu0 %vm47_vm0, %v13_v5 }
   0xb   :  { %1392 = vmatprep.mubr.msk.f32.mxu0 %vm47_vm0, %v14_v6 }
   0xc   :  { %7 = vsyncpa [#allocation3], 0  ;;  %v17_v9 = vld [vmem:[%s2069_s0 + $0x28] sm:$0xff]  ;;  %v18_v10 = vld [vmem:[%s2069_s0 + $0x30] sm:$0xff]  ;;  %s1576_s30 = smov 104   ;;  %vm574_vm2 = vcmask 195584  }
   0xd   :  { %v19_v11 = vld [vmem:[%s2069_s0 + $0x38] sm:$0xff]  ;;  %v20_v12 = vld [vmem:[%s2069_s0 + $0x40] sm:$0xff]  ;;  %v21_v13 = vld [vmem:[%s2069_s0 + $0x48] sm:$0xff]  ;;  %vm971_vm3 = vcmask 392192  }
   0xe   :  { %1393 = vmatmul.mubr.msk.f32.gmra.mrb[2].mxu0 %vm47_vm0, %v15_v7  ;;  %v22_v14 = vld [vmem:[%s2069_s0 + $0x50] sm:$0xff]  ;;  %v23_v15 = vld [vmem:[%s2069_s0 + $0x58] sm:$0xff]  ;;  %v24_v16 = vld [vmem:[%s2069_s0 + $0x60] sm:$0xff] }
   0xf   :  { %1395 = vmatprep.mubr.msk.f32.mxu0 %vm47_vm0, %v16_v8  ;;  %v25_v17 = vld [vmem:[%s2069_s0 + $0x68] sm:$0xff]  ;;  %v26_v18 = vld [vmem:[%s2069_s0 + $0x70] sm:$0xff]  ;;  %v27_v19 = vld [vmem:[%s2069_s0 + $0x78] sm:$0xff] }
  0x10   :  { %v28_v20 = vld [vmem:[%s2069_s0 + $0x80] sm:$0xff]  ;;  %v29_v21 = vld [vmem:[%s2069_s0 + $0x88] sm:$0xff]  ;;  %v30_v22 = vld [vmem:[%s2069_s0 + $0x90] sm:$0xff] }
  0x11   :  { %v31_v23 = vld [vmem:[%s2069_s0 + $0x98] sm:$0xff]  ;;  %v32_v24 = vld [vmem:[%s2069_s0 + $0xa0] sm:$0xff]  ;;  %v33_v25 = vld [vmem:[%s2069_s0 + $0xa8] sm:$0xff] }
  0x12   :  { %1396 = vmatmul.mubr.msk.f32.gmra.mrb[4].mxu0 %vm47_vm0, %v17_v9  ;;  %v34_v26 = vld [vmem:[%s2069_s0 + $0xb0] sm:$0xff]  ;;  %v35_v27 = vld [vmem:[%s2069_s0 + $0xb8] sm:$0xff]  ;;  %v36_v28 = vld [vmem:[%s2069_s0 + $0xc0] sm:$0xff] }
  0x13   :  { %1398 = vmatprep.mubr.msk.f32.mxu0 %vm47_vm0, %v18_v10  ;;  %v37_v29 = vld [vmem:[%s2069_s0 + $0xc8] sm:$0xff]  ;;  %v38_v30 = vld [vmem:[%s2069_s0 + $0xd0] sm:$0xff]  ;;  %v39_v31 = vld [vmem:[%s2069_s0 + $0xd8] sm:$0xff] }
  0x14   :  { %v40_v32 = vld [vmem:[%s2069_s0 + $0xe0] sm:$0xff]  ;;  %v41_v33 = vld [vmem:[%s2069_s0 + $0xe8] sm:$0xff]  ;;  %v42_v34 = vld [vmem:[%s2069_s0 + $0xf0] sm:$0xff] }
  0x15   :  { %v43_v35 = vld [vmem:[%s2069_s0 + $0xf8] sm:$0xff]  ;;  %v444_v37 = vld [vmem:[%s2070_s1 + $0x20] sm:$0xff]  ;;  %v445_v39 = vld [vmem:[%s2070_s1 + $0x28] sm:$0xff] }
  0x16   :  { %1399 = vmatmul.mubr.msk.f32.gmra.mrb[6].mxu0 %vm47_vm0, %v19_v11  ;;  %v443_v36 = vld [vmem:[%s2070_s1 + $0x18] sm:$0xff]  ;;  %v1744_v40 = vld [vmem:[%s2070_s1 + $0x31] ss:$0 sm:$0xff]  ;;  %vm1986_vm4 = vmpackc.low %vm971_vm3, %vm971_vm3 }
  0x17   :  { %1401 = vmatprep.mubr.msk.f32.mxu0 %vm47_vm0, %v20_v12  ;;  %v1495_v38 = vpack.c.bf16 %v444_v37, %v443_v36 }
  0x19   :  { %1496 = vmatprep.subr.bf16.mxu1 %v1495_v38 }
  0x1a   :  { %1402 = vmatmul.mubr.msk.f32.gmra.mrb[8].mxu0 %vm47_vm0, %v21_v13  ;;  %1498 = vmatpush3.bf16.msra.mxu1 %v1495_v38 }
  0x1b   :  { %1404 = vmatprep.mubr.msk.f32.mxu0 %vm47_vm0, %v22_v14  ;;  %1441 = vmatprep.subr.mxu1 %v445_v39 }
  0x1e   :  { %1405 = vmatmul.mubr.msk.f32.gmra.mrb[10].mxu0 %vm47_vm0, %v23_v15  ;;  %1442 = vmatpush3.msra.mxu1 %v445_v39 }
  0x1f   :  { %1407 = vmatprep.mubr.msk.f32.mxu0 %vm47_vm0, %v24_v16 }
  0x22   :  { %1408 = vmatmul.mubr.msk.f32.gmra.mrb[12].mxu0 %vm47_vm0, %v25_v17 }
  0x23   :  { %1410 = vmatprep.mubr.msk.f32.mxu0 %vm47_vm0, %v26_v18 }
  0x26   :  { %1411 = vmatmul.mubr.msk.f32.gmra.mrb[14].mxu0 %vm47_vm0, %v27_v19 }
  0x27   :  { %1413 = vmatprep.mubr.msk.f32.mxu0 %vm47_vm0, %v28_v20 }
  0x2a   :  { %1414 = vmatmul.mubr.msk.f32.gmra.mrb[16].mxu0 %vm47_vm0, %v29_v21 }
  0x2b   :  { %1416 = vmatprep.mubr.msk.f32.mxu0 %vm47_vm0, %v30_v22 }
  0x2e   :  { %1417 = vmatmul.mubr.msk.f32.gmra.mrb[18].mxu0 %vm47_vm0, %v31_v23 }
  0x2f   :  { %1419 = vmatprep.mubr.msk.f32.mxu0 %vm47_vm0, %v32_v24 }
  0x32   :  { %1420 = vmatmul.mubr.msk.f32.gmra.mrb[20].mxu0 %vm47_vm0, %v33_v25 }
  0x33   :  { %1422 = vmatprep.mubr.msk.f32.mxu0 %vm47_vm0, %v34_v26 }
  0x36   :  { %1423 = vmatmul.mubr.msk.f32.gmra.mrb[22].mxu0 %vm47_vm0, %v35_v27 }
  0x37   :  { %1425 = vmatprep.mubr.msk.f32.mxu0 %vm47_vm0, %v36_v28 }
  0x3a   :  { %1426 = vmatmul.mubr.msk.f32.gmra.mrb[24].mxu0 %vm47_vm0, %v37_v29 }
  0x3b   :  { %1428 = vmatprep.mubr.msk.f32.mxu0 %vm47_vm0, %v38_v30 }
  0x3e   :  { %1429 = vmatmul.mubr.msk.f32.gmra.mrb[26].mxu0 %vm47_vm0, %v39_v31 }
  0x3f   :  { %1431 = vmatprep.mubr.msk.f32.mxu0 %vm47_vm0, %v40_v32 }
  0x42   :  { %1432 = vmatmul.mubr.msk.f32.gmra.mrb[28].mxu0 %vm47_vm0, %v41_v33 }
  0x43   :  { %1434 = vmatprep.mubr.msk.f32.mxu0 %vm47_vm0, %v42_v34 }
  0x46   :  { %1435 = vmatmul.mubr.msk.f32.gmra.mrb[30].mxu0 %vm47_vm0, %v43_v35 }
  0xdd   :  { %v1391_v41 = vpop.f32.mrb[0].mxu0 }
  0xde   :  { %v379_v42 = vadd.f32 %v1391_v41, %v1744_v40  ;;  %v214_v43 = vpop.f32.mrb[1].mxu0 }
  0xdf   :  { %v378_v44 = vadd.f32 %v1744_v40, %v214_v43  ;;  %478 = vrot.lane.b32.xlu1 %v214_v43, %s1576_s30 }
  0xe0   :  { %v411_v47 = vmax.f32 %v379_v42, 0.0 }
  0xe1   :  { %v1749_v45 = vpop.f32.mrb[2].mxu0  ;;  %v410_v46 = vmax.f32 %v378_v44, 0.0 }
  0xe2   :  { %v381_v48 = vadd.f32 %v1749_v45, %v1744_v40  ;;  %v1753_v49 = vpop.f32.mrb[3].mxu0 }
  0xe3   :  { %v380_v50 = vadd.f32 %v1744_v40, %v1753_v49  ;;  %480 = vrot.lane.b32.xlu1 %v1391_v41, %s1576_s30  ;;  %1443 = vmatprep.mubr.msk.f32.mxu1 %vm574_vm2, %v410_v46 }
  0xe4   :  { %1444 = vmatmul.mubr.msk.f32.vlgmr.msra.gmra.mrb[0].mxu1 %vm574_vm2, %v411_v47  ;;  %v413_v53 = vmax.f32 %v381_v48, 0.0 }
  0xe5   :  { %v412_v51 = vmax.f32 %v380_v50, 0.0  ;;  %v1760_v52 = vpop.f32.mrb[4].mxu0 }
  0xe6   :  { %v383_v54 = vadd.f32 %v1760_v52, %v1744_v40  ;;  %v1764_v55 = vpop.f32.mrb[5].mxu0 }
  0xe7   :  { %v382_v56 = vadd.f32 %v1744_v40, %v1764_v55  ;;  %1446 = vmatprep.mubr.msk.f32.mxu1 %vm574_vm2, %v412_v51 }
  0xe8   :  { %1447 = vmatmul.mubr.msk.f32.gmra.mrb[2].mxu1 %vm574_vm2, %v413_v53  ;;  %v415_v59 = vmax.f32 %v383_v54, 0.0 }
  0xe9   :  { %v414_v57 = vmax.f32 %v382_v56, 0.0  ;;  %v1770_v58 = vpop.f32.mrb[6].mxu0 }
  0xea   :  { %v385_v60 = vadd.f32 %v1770_v58, %v1744_v40  ;;  %v1774_v61 = vpop.f32.mrb[7].mxu0 }
  0xeb   :  { %v384_v62 = vadd.f32 %v1744_v40, %v1774_v61  ;;  %1449 = vmatprep.mubr.msk.f32.mxu1 %vm574_vm2, %v414_v57 }
  0xec   :  { %1450 = vmatmul.mubr.msk.f32.gmra.mrb[4].mxu1 %vm574_vm2, %v415_v59  ;;  %v417_v1 = vmax.f32 %v385_v60, 0.0 }
  0xed   :  { %v416_v63 = vmax.f32 %v384_v62, 0.0  ;;  %v1780_v0 = vpop.f32.mrb[8].mxu0 }
  0xee   :  { %v387_v2 = vadd.f32 %v1780_v0, %v1744_v40  ;;  %v1784_v3 = vpop.f32.mrb[9].mxu0 }
  0xef   :  { %v386_v4 = vadd.f32 %v1744_v40, %v1784_v3  ;;  %1452 = vmatprep.mubr.msk.f32.mxu1 %vm574_vm2, %v416_v63 }
  0xf0   :  { %1453 = vmatmul.mubr.msk.f32.gmra.mrb[6].mxu1 %vm574_vm2, %v417_v1  ;;  %v419_v7 = vmax.f32 %v387_v2, 0.0 }
  0xf1   :  { %v418_v5 = vmax.f32 %v386_v4, 0.0  ;;  %v1790_v6 = vpop.f32.mrb[10].mxu0 }
  0xf2   :  { %v389_v8 = vadd.f32 %v1790_v6, %v1744_v40  ;;  %v1794_v9 = vpop.f32.mrb[11].mxu0 }
  0xf3   :  { %v388_v10 = vadd.f32 %v1744_v40, %v1794_v9  ;;  %1455 = vmatprep.mubr.msk.f32.mxu1 %vm574_vm2, %v418_v5 }
  0xf4   :  { %1456 = vmatmul.mubr.msk.f32.gmra.mrb[8].mxu1 %vm574_vm2, %v419_v7  ;;  %v421_v13 = vmax.f32 %v389_v8, 0.0 }
  0xf5   :  { %v420_v11 = vmax.f32 %v388_v10, 0.0  ;;  %v1800_v12 = vpop.f32.mrb[12].mxu0 }
  0xf6   :  { %v391_v14 = vadd.f32 %v1800_v12, %v1744_v40  ;;  %v1804_v15 = vpop.f32.mrb[13].mxu0 }
  0xf7   :  { %v390_v16 = vadd.f32 %v1744_v40, %v1804_v15  ;;  %1458 = vmatprep.mubr.msk.f32.mxu1 %vm574_vm2, %v420_v11 }
  0xf8   :  { %1459 = vmatmul.mubr.msk.f32.gmra.mrb[10].mxu1 %vm574_vm2, %v421_v13  ;;  %v423_v19 = vmax.f32 %v391_v14, 0.0 }
  0xf9   :  { %v422_v17 = vmax.f32 %v390_v16, 0.0  ;;  %v1810_v18 = vpop.f32.mrb[14].mxu0 }
  0xfa   :  { %v393_v20 = vadd.f32 %v1810_v18, %v1744_v40  ;;  %v1814_v21 = vpop.f32.mrb[15].mxu0 }
  0xfb   :  { %v392_v22 = vadd.f32 %v1744_v40, %v1814_v21  ;;  %1461 = vmatprep.mubr.msk.f32.mxu1 %vm574_vm2, %v422_v17 }
  0xfc   :  { %1462 = vmatmul.mubr.msk.f32.gmra.mrb[12].mxu1 %vm574_vm2, %v423_v19  ;;  %v425_v25 = vmax.f32 %v393_v20, 0.0 }
  0xfd   :  { %v424_v23 = vmax.f32 %v392_v22, 0.0  ;;  %v1415_v24 = vpop.f32.mrb[16].mxu0 }
  0xfe   :  { %v395_v26 = vadd.f32 %v1415_v24, %v1744_v40  ;;  %v294_v27 = vpop.f32.mrb[17].mxu0 }
  0xff   :  { %v394_v28 = vadd.f32 %v1744_v40, %v294_v27  ;;  %1464 = vmatprep.mubr.msk.f32.mxu1 %vm574_vm2, %v424_v23  ;;  %510 = vrot.lane.b32.xlu0 %v294_v27, %s1576_s30 }
 0x100   :  { %1465 = vmatmul.mubr.msk.f32.gmra.mrb[14].mxu1 %vm574_vm2, %v425_v25  ;;  %v427_v31 = vmax.f32 %v395_v26, 0.0  ;;  %v1577_v25 = vmov 0  }
 0x101   :  { %v426_v29 = vmax.f32 %v394_v28, 0.0  ;;  %v1418_v30 = vpop.f32.mrb[18].mxu0  ;;  %1551 = vset.pattern.permute.xlu0 %v1577_v25 }
 0x102   :  { %v397_v32 = vadd.f32 %v1418_v30, %v1744_v40  ;;  %516 = vrot.lane.b32.xlu1 %v1418_v30, %s1576_s30  ;;  %v304_v33 = vpop.f32.mrb[19].mxu0 }
 0x103   :  { %v396_v34 = vadd.f32 %v1744_v40, %v304_v33  ;;  %512 = vrot.lane.b32.xlu0 %v1415_v24, %s1576_s30  ;;  %1467 = vmatprep.mubr.msk.f32.mxu1 %vm574_vm2, %v426_v29  ;;  %v965_v24 = vld [vmem:[%s2070_s1 + $0x33] sm:$0x1] }
 0x104   :  { %v429_v35 = vmax.f32 %v397_v32, 0.0  ;;  %1468 = vmatmul.mubr.msk.f32.gmra.mrb[16].mxu1 %vm574_vm2, %v427_v31 }
 0x105   :  { %v428_v36 = vmax.f32 %v396_v34, 0.0  ;;  %v1421_v37 = vpop.f32.mrb[20].mxu0  ;;  %v1935_v34 = vld [vmem:[%s2070_s1 + $0x32] ss:$0 sm:$0xff] }
 0x106   :  { %v399_v38 = vadd.f32 %v1421_v37, %v1744_v40  ;;  %484 = vrot.lane.b32.xlu1 %v1749_v45, %s1576_s30  ;;  %v314_v39 = vpop.f32.mrb[21].mxu0 }
 0x107   :  { %v398_v41 = vadd.f32 %v1744_v40, %v314_v39  ;;  %514 = vrot.lane.b32.xlu0 %v304_v33, %s1576_s30  ;;  %1470 = vmatprep.mubr.msk.f32.mxu1 %vm574_vm2, %v428_v36 }
 0x108   :  { %v431_v42 = vmax.f32 %v399_v38, 0.0  ;;  %1471 = vmatmul.mubr.msk.f32.gmra.mrb[18].mxu1 %vm574_vm2, %v429_v35 }
 0x109   :  { %v430_v43 = vmax.f32 %v398_v41, 0.0  ;;  %v1424_v44 = vpop.f32.mrb[22].mxu0 }
 0x10a   :  { %v401_v46 = vadd.f32 %v1424_v44, %v1744_v40  ;;  %520 = vrot.lane.b32.xlu1 %v1421_v37, %s1576_s30  ;;  %v324_v47 = vpop.f32.mrb[23].mxu0 }
 0x10b   :  { %v400_v48 = vadd.f32 %v1744_v40, %v324_v47  ;;  %482 = vrot.lane.b32.xlu0 %v1753_v49, %s1576_s30  ;;  %1473 = vmatprep.mubr.msk.f32.mxu1 %vm574_vm2, %v430_v43 }
 0x10c   :  { %v433_v45 = vmax.f32 %v401_v46, 0.0  ;;  %1474 = vmatmul.mubr.msk.f32.gmra.mrb[20].mxu1 %vm574_vm2, %v431_v42 }
 0x10d   :  { %v432_v50 = vmax.f32 %v400_v48, 0.0  ;;  %v1427_v51 = vpop.f32.mrb[24].mxu0 }
 0x10e   :  { %v403_v53 = vadd.f32 %v1427_v51, %v1744_v40  ;;  %488 = vrot.lane.b32.xlu1 %v1760_v52, %s1576_s30  ;;  %v334_v54 = vpop.f32.mrb[25].mxu0 }
 0x10f   :  { %v402_v56 = vadd.f32 %v1744_v40, %v334_v54  ;;  %518 = vrot.lane.b32.xlu0 %v314_v39, %s1576_s30  ;;  %1476 = vmatprep.mubr.msk.f32.mxu1 %vm574_vm2, %v432_v50 }
 0x110   :  { %v435_v49 = vmax.f32 %v403_v53, 0.0  ;;  %1477 = vmatmul.mubr.msk.f32.gmra.mrb[22].mxu1 %vm574_vm2, %v433_v45 }
 0x111   :  { %v434_v57 = vmax.f32 %v402_v56, 0.0  ;;  %v1430_v59 = vpop.f32.mrb[26].mxu0 }
 0x112   :  { %v405_v60 = vadd.f32 %v1430_v59, %v1744_v40  ;;  %524 = vrot.lane.b32.xlu1 %v1424_v44, %s1576_s30  ;;  %v344_v62 = vpop.f32.mrb[27].mxu0 }
 0x113   :  { %v404_v63 = vadd.f32 %v1744_v40, %v344_v62  ;;  %486 = vrot.lane.b32.xlu0 %v1764_v55, %s1576_s30  ;;  %1479 = vmatprep.mubr.msk.f32.mxu1 %vm574_vm2, %v434_v57 }
 0x114   :  { %v437_v52 = vmax.f32 %v405_v60, 0.0  ;;  %1480 = vmatmul.mubr.msk.f32.gmra.mrb[24].mxu1 %vm574_vm2, %v435_v49 }
 0x115   :  { %v436_v1 = vmax.f32 %v404_v63, 0.0  ;;  %v1433_v2 = vpop.f32.mrb[28].mxu0 }
 0x116   :  { %v407_v4 = vadd.f32 %v1433_v2, %v1744_v40  ;;  %492 = vrot.lane.b32.xlu1 %v1770_v58, %s1576_s30  ;;  %v354_v5 = vpop.f32.mrb[29].mxu0 }
 0x117   :  { %v406_v7 = vadd.f32 %v1744_v40, %v354_v5  ;;  %522 = vrot.lane.b32.xlu0 %v324_v47, %s1576_s30  ;;  %1482 = vmatprep.mubr.msk.f32.mxu1 %vm574_vm2, %v436_v1 }
 0x118   :  { %v439_v55 = vmax.f32 %v407_v4, 0.0  ;;  %1483 = vmatmul.mubr.msk.f32.gmra.mrb[26].mxu1 %vm574_vm2, %v437_v52 }
 0x119   :  { %v438_v8 = vmax.f32 %v406_v7, 0.0  ;;  %v1436_v10 = vpop.f32.mrb[30].mxu0 }
 0x11a   :  { %v409_v11 = vadd.f32 %v1436_v10, %v1744_v40  ;;  %528 = vrot.lane.b32.xlu1 %v1427_v51, %s1576_s30  ;;  %v364_v13 = vpop.f32.mrb[31].mxu0 }
 0x11b   :  { %v408_v14 = vadd.f32 %v1744_v40, %v364_v13  ;;  %490 = vrot.lane.b32.xlu0 %v1774_v61, %s1576_s30  ;;  %1485 = vmatprep.mubr.msk.f32.mxu1 %vm574_vm2, %v438_v8 }
 0x11c   :  { %v441_v58 = vmax.f32 %v409_v11, 0.0  ;;  %1486 = vmatmul.mubr.msk.f32.gmra.mrb[28].mxu1 %vm574_vm2, %v439_v55 }
 0x11d   :  { %v440_v16 = vmax.f32 %v408_v14, 0.0 }
 0x11e   :  { %496 = vrot.lane.b32.xlu1 %v1780_v0, %s1576_s30 }
 0x11f   :  { %526 = vrot.lane.b32.xlu0 %v334_v54, %s1576_s30  ;;  %1488 = vmatprep.mubr.msk.f32.mxu1 %vm574_vm2, %v440_v16 }
 0x120   :  { %1489 = vmatmul.mubr.msk.f32.gmra.mrb[30].mxu1 %vm574_vm2, %v441_v58 }
 0x122   :  { %532 = vrot.lane.b32.xlu1 %v1430_v59, %s1576_s30 }
 0x123   :  { %494 = vrot.lane.b32.xlu0 %v1784_v3, %s1576_s30 }
 0x126   :  { %500 = vrot.lane.b32.xlu1 %v1790_v6, %s1576_s30 }
 0x127   :  { %530 = vrot.lane.b32.xlu0 %v344_v62, %s1576_s30 }
 0x12a   :  { %536 = vrot.lane.b32.xlu1 %v1433_v2, %s1576_s30 }
 0x12b   :  { %498 = vrot.lane.b32.xlu0 %v1794_v9, %s1576_s30 }
 0x12e   :  { %504 = vrot.lane.b32.xlu1 %v1800_v12, %s1576_s30 }
 0x12f   :  { %534 = vrot.lane.b32.xlu0 %v354_v5, %s1576_s30 }
 0x132   :  { %540 = vrot.lane.b32.xlu1 %v1436_v10, %s1576_s30 }
 0x133   :  { %502 = vrot.lane.b32.xlu0 %v1804_v15, %s1576_s30 }
 0x136   :  { %508 = vrot.lane.b32.xlu1 %v1810_v18, %s1576_s30 }
 0x137   :  { %538 = vrot.lane.b32.xlu0 %v364_v13, %s1576_s30 }
 0x13b   :  { %506 = vrot.lane.b32.xlu0 %v1814_v21, %s1576_s30  ;;  %v1913_v21 = vld [vmem:[%s2070_s1 + $0x30] sm:$0x1]  ;;  %s1579_s1 = smov [#allocation2]  }
 0x13c   :  { %1381 = vmatprep.mubr.msk.f32.mxu0 %vm971_vm3, %v1913_v21  ;;  %s1171_s9 = sshll.u32 %s1579_s1, 4  ;;  %s1172_s9 = int_to_ptr.vmem [resolvable:$true] %s1171_s9 }
 0x13d   :  { %s1552_s10 = scalar_lea.vmem %s1172_s9, 32  ;;  %p1557_p1 = scmp.lt.s32.totalorder %s1172_s9, %s1172_s9 }
 0x13e   :  { %p1553_p0 = scmp.ne.s32.totalorder %s1172_s9, %s1552_s10  ;;  %p1558_p2 = scmp.lt.s32.totalorder %s1552_s10, %s1552_s10 }
 0x13f   :  { %968 = vperm.xlu0 %1551, %v965_v24  }
 0x140   :  { %p1559_p3 = por %p1558_p2, %p1557_p1 }
 0x142   :  { %p1560_p4 = pnand %p1559_p3, %p1553_p0 }
 0x151   :  { %v479_v61 = vpop.permute.xlu1 %478 }
 0x155   :  { %v481_v3 = vpop.permute.xlu1 %480 }
 0x171   :  { %v1898_v40 = vpop.permute.xlu0 %510 }
 0x174   :  { %v1902_v6 = vpop.permute.xlu1 %516 }
 0x175   :  { %v1900_v0 = vpop.permute.xlu0 %512 }
 0x178   :  { %v485_v12 = vpop.permute.xlu1 %484 }
 0x179   :  { %v1904_v9 = vpop.permute.xlu0 %514 }
 0x17c   :  { %v1906_v17 = vpop.permute.xlu1 %520 }
 0x17d   :  { %v483_v15 = vpop.permute.xlu0 %482 }
 0x180   :  { %v489_v19 = vpop.permute.xlu1 %488 }
 0x181   :  { %v1908_v18 = vpop.permute.xlu0 %518 }
 0x184   :  { %v1917_v22 = vpop.permute.xlu1 %524 }
 0x185   :  { %v487_v20 = vpop.permute.xlu0 %486 }
 0x188   :  { %v493_v26 = vpop.permute.xlu1 %492 }
 0x189   :  { %v1919_v23 = vpop.permute.xlu0 %522 }
 0x18c   :  { %v1924_v28 = vpop.permute.xlu1 %528 }
 0x18d   :  { %v491_v27 = vpop.permute.xlu0 %490 }
 0x190   :  { %v497_v30 = vpop.permute.xlu1 %496 }
 0x191   :  { %v1926_v29 = vpop.permute.xlu0 %526 }
 0x194   :  { %v1928_v32 = vpop.permute.xlu1 %532 }
 0x195   :  { %v495_v31 = vpop.permute.xlu0 %494 }
 0x198   :  { %v501_v41 = vpop.permute.xlu1 %500 }
 0x199   :  { %v1930_v33 = vpop.permute.xlu0 %530 }
 0x19c   :  { %v1943_v60 = vpop.permute.xlu1 %536 }
 0x19d   :  { %v499_v44 = vpop.permute.xlu0 %498 }
 0x1a0   :  { %v505_v14 = vpop.permute.xlu1 %504 }
 0x1a1   :  { %v1945_v52 = vpop.permute.xlu0 %534 }
 0x1b7   :  { %v1445_v35 = vpop.f32.mrb[0].mxu1 }
 0x1b8   :  { %v743_v36 = vadd.f32 %v1445_v35, %v481_v3  ;;  %v737_v37 = vpop.f32.mrb[1].mxu1  ;;  %v503_v3 = vpop.permute.xlu0 %502 }
 0x1b9   :  { %v738_v38 = vadd.f32 %v737_v37, %v479_v61 }
 0x1ba   :  { %v901_v39 = vadd.f32 %v1935_v34, %v743_v36 }
 0x1bb   :  { %v900_v42 = vadd.f32 %v1935_v34, %v738_v38  ;;  %v1448_v43 = vpop.f32.mrb[2].mxu1 }
 0x1bc   :  { %v933_v46 = vmax.f32 %v901_v39, 0.0  ;;  %v753_v47 = vadd.f32 %v1448_v43, %v485_v12  ;;  %v747_v48 = vpop.f32.mrb[3].mxu1  ;;  %v1959_v39 = vpop.permute.xlu1 %540 }
 0x1bd   :  { %v932_v45 = vmax.f32 %v900_v42, 0.0  ;;  %v748_v50 = vadd.f32 %v747_v48, %v483_v15 }
 0x1be   :  { %v903_v51 = vadd.f32 %v1935_v34, %v753_v47 }
 0x1bf   :  { %v1940_v53 = vpack.c.bf16 %v933_v46, %v932_v45  ;;  %v902_v54 = vadd.f32 %v1935_v34, %v748_v50  ;;  %v1451_v56 = vpop.f32.mrb[4].mxu1  ;;  %v1961_v46 = vpop.permute.xlu0 %538 }
 0x1c0   :  { %v935_v49 = vmax.f32 %v903_v51, 0.0  ;;  %v763_v57 = vadd.f32 %v1451_v56, %v489_v19  ;;  %v757_v59 = vpop.f32.mrb[5].mxu1 }
 0x1c1   :  { %v934_v62 = vmax.f32 %v902_v54, 0.0  ;;  %v758_v63 = vadd.f32 %v757_v59, %v487_v20 }
 0x1c2   :  { %v905_v1 = vadd.f32 %v1935_v34, %v763_v57 }
 0x1c3   :  { %v1948_v2 = vpack.c.bf16 %v935_v49, %v934_v62  ;;  %v904_v4 = vadd.f32 %v1935_v34, %v758_v63  ;;  %v1454_v5 = vpop.f32.mrb[6].mxu1  ;;  %v509_v49 = vpop.permute.xlu1 %508 }
 0x1c4   :  { %v937_v7 = vmax.f32 %v905_v1, 0.0  ;;  %v773_v55 = vadd.f32 %v1454_v5, %v493_v26  ;;  %v767_v8 = vpop.f32.mrb[7].mxu1  ;;  %v507_v62 = vpop.permute.xlu0 %506 }
 0x1c5   :  { %v936_v10 = vmax.f32 %v904_v4, 0.0  ;;  %v768_v11 = vadd.f32 %v767_v8, %v491_v27 }
 0x1c6   :  { %v907_v13 = vadd.f32 %v1935_v34, %v773_v55 }
 0x1c7   :  { %v1952_v58 = vpack.c.bf16 %v937_v7, %v936_v10  ;;  %v906_v16 = vadd.f32 %v1935_v34, %v768_v11  ;;  %v1457_v61 = vpop.f32.mrb[8].mxu1 }
 0x1c8   :  { %v939_v12 = vmax.f32 %v907_v13, 0.0  ;;  %v783_v15 = vadd.f32 %v1457_v61, %v497_v30  ;;  %v777_v19 = vpop.f32.mrb[9].mxu1 }
 0x1c9   :  { %v938_v20 = vmax.f32 %v906_v16, 0.0  ;;  %v778_v24 = vadd.f32 %v777_v19, %v495_v31 }
 0x1ca   :  { %v909_v25 = vadd.f32 %v1935_v34, %v783_v15 }
 0x1cb   :  { %v1956_v26 = vpack.c.bf16 %v939_v12, %v938_v20  ;;  %v908_v27 = vadd.f32 %v1935_v34, %v778_v24  ;;  %v1460_v35 = vpop.f32.mrb[10].mxu1 }
 0x1cc   :  { %v941_v36 = vmax.f32 %v909_v25, 0.0  ;;  %v793_v37 = vadd.f32 %v1460_v35, %v501_v41  ;;  %v787_v38 = vpop.f32.mrb[11].mxu1 }
 0x1cd   :  { %v940_v42 = vmax.f32 %v908_v27, 0.0  ;;  %v788_v43 = vadd.f32 %v787_v38, %v499_v44 }
 0x1ce   :  { %v911_v30 = vadd.f32 %v1935_v34, %v793_v37 }
 0x1cf   :  { %v1964_v47 = vpack.c.bf16 %v941_v36, %v940_v42  ;;  %v910_v31 = vadd.f32 %v1935_v34, %v788_v43  ;;  %v1463_v48 = vpop.f32.mrb[12].mxu1 }
 0x1d0   :  { %v943_v45 = vmax.f32 %v911_v30, 0.0  ;;  %v803_v50 = vadd.f32 %v1463_v48, %v505_v14  ;;  %v797_v51 = vpop.f32.mrb[13].mxu1 }
 0x1d1   :  { %v942_v54 = vmax.f32 %v910_v31, 0.0  ;;  %v798_v56 = vadd.f32 %v797_v51, %v503_v3 }
 0x1d2   :  { %v913_v41 = vadd.f32 %v1935_v34, %v803_v50 }
 0x1d3   :  { %v1968_v57 = vpack.c.bf16 %v943_v45, %v942_v54  ;;  %v912_v44 = vadd.f32 %v1935_v34, %v798_v56  ;;  %v1466_v59 = vpop.f32.mrb[14].mxu1 }
 0x1d4   :  { %v945_v63 = vmax.f32 %v913_v41, 0.0  ;;  %v813_v1 = vadd.f32 %v1466_v59, %v509_v49  ;;  %v807_v4 = vpop.f32.mrb[15].mxu1 }
 0x1d5   :  { %v944_v5 = vmax.f32 %v912_v44, 0.0  ;;  %v808_v7 = vadd.f32 %v807_v4, %v507_v62 }
 0x1d6   :  { %v915_v55 = vadd.f32 %v1935_v34, %v813_v1 }
 0x1d7   :  { %v1972_v8 = vpack.c.bf16 %v945_v63, %v944_v5  ;;  %v914_v10 = vadd.f32 %v1935_v34, %v808_v7  ;;  %v1469_v11 = vpop.f32.mrb[16].mxu1 }
 0x1d8   :  { %v947_v13 = vmax.f32 %v915_v55, 0.0  ;;  %v823_v14 = vadd.f32 %v1469_v11, %v1900_v0  ;;  %v817_v16 = vpop.f32.mrb[17].mxu1 }
 0x1d9   :  { %v946_v61 = vmax.f32 %v914_v10, 0.0  ;;  %v818_v3 = vadd.f32 %v817_v16, %v1898_v40 }
 0x1da   :  { %v917_v12 = vadd.f32 %v1935_v34, %v823_v14 }
 0x1db   :  { %v1978_v15 = vpack.c.bf16 %v947_v13, %v946_v61  ;;  %v916_v19 = vadd.f32 %v1935_v34, %v818_v3  ;;  %v1472_v20 = vpop.f32.mrb[18].mxu1 }
 0x1dc   :  { %v949_v24 = vmax.f32 %v917_v12, 0.0  ;;  %v833_v25 = vadd.f32 %v1472_v20, %v1902_v6  ;;  %v827_v27 = vpop.f32.mrb[19].mxu1 }
 0x1dd   :  { %v948_v35 = vmax.f32 %v916_v19, 0.0  ;;  %v828_v36 = vadd.f32 %v827_v27, %v1904_v9 }
 0x1de   :  { %v919_v0 = vadd.f32 %v1935_v34, %v833_v25 }
 0x1df   :  { %v1499_v37 = vpack.c.bf16 %v949_v24, %v948_v35  ;;  %v918_v38 = vadd.f32 %v1935_v34, %v828_v36  ;;  %v1475_v42 = vpop.f32.mrb[20].mxu1 }
 0x1e0   :  { %v951_v43 = vmax.f32 %v919_v0, 0.0  ;;  %v843_v30 = vadd.f32 %v1475_v42, %v1906_v17  ;;  %v837_v6 = vpop.f32.mrb[21].mxu1 }
 0x1e1   :  { %v950_v31 = vmax.f32 %v918_v38, 0.0  ;;  %v838_v48 = vadd.f32 %v837_v6, %v1908_v18  ;;  %1501 = vmatprep.subr.msk.bf16.mxu0 %vm1986_vm4, %v1499_v37 }
 0x1e2   :  { %v921_v9 = vadd.f32 %v1935_v34, %v843_v30  ;;  %1504 = vmatpush3.bf16.xpose.msk.msra.mxu0 %vm1986_vm4, %v1940_v53 }
 0x1e3   :  { %v1505_v45 = vpack.c.bf16 %v951_v43, %v950_v31  ;;  %v920_v50 = vadd.f32 %v1935_v34, %v838_v48  ;;  %v1478_v51 = vpop.f32.mrb[22].mxu1 }
 0x1e4   :  { %v953_v54 = vmax.f32 %v921_v9, 0.0  ;;  %v853_v17 = vadd.f32 %v1478_v51, %v1917_v22  ;;  %v847_v56 = vpop.f32.mrb[23].mxu1 }
 0x1e5   :  { %v952_v41 = vmax.f32 %v920_v50, 0.0  ;;  %v848_v18 = vadd.f32 %v847_v56, %v1919_v23  ;;  %1507 = vmatprep.subr.msk.bf16.mxu0 %vm1986_vm4, %v1505_v45 }
 0x1e6   :  { %v923_v49 = vadd.f32 %v1935_v34, %v853_v17 }
 0x1e7   :  { %v1511_v44 = vpack.c.bf16 %v953_v54, %v952_v41  ;;  %v922_v59 = vadd.f32 %v1935_v34, %v848_v18  ;;  %v1481_v53 = vpop.f32.mrb[24].mxu1 }
 0x1e8   :  { %v955_v62 = vmax.f32 %v923_v49, 0.0  ;;  %v863_v63 = vadd.f32 %v1481_v53, %v1924_v28  ;;  %v857_v1 = vpop.f32.mrb[25].mxu1 }
 0x1e9   :  { %v954_v4 = vmax.f32 %v922_v59, 0.0  ;;  %v858_v22 = vadd.f32 %v857_v1, %v1926_v29 }
 0x1ea   :  { %v925_v5 = vadd.f32 %v1935_v34, %v863_v63  ;;  %1510 = vmatpush3.bf16.xpose.msk.msra.mxu0 %vm1986_vm4, %v1948_v2 }
 0x1eb   :  { %v1517_v23 = vpack.c.bf16 %v955_v62, %v954_v4  ;;  %v924_v7 = vadd.f32 %v1935_v34, %v858_v22  ;;  %v1484_v55 = vpop.f32.mrb[26].mxu1  ;;  %1513 = vmatprep.subr.msk.bf16.mxu0 %vm1986_vm4, %v1511_v44 }
 0x1ec   :  { %v957_v10 = vmax.f32 %v925_v5, 0.0  ;;  %v873_v28 = vadd.f32 %v1484_v55, %v1928_v32  ;;  %v867_v11 = vpop.f32.mrb[27].mxu1 }
 0x1ed   :  { %v956_v13 = vmax.f32 %v924_v7, 0.0  ;;  %v868_v29 = vadd.f32 %v867_v11, %v1930_v33 }
 0x1ee   :  { %v927_v14 = vadd.f32 %v1935_v34, %v873_v28 }
 0x1ef   :  { %v1523_v16 = vpack.c.bf16 %v957_v10, %v956_v13  ;;  %v926_v61 = vadd.f32 %v1935_v34, %v868_v29  ;;  %v1487_v2 = vpop.f32.mrb[28].mxu1 }
 0x1f0   :  { %v959_v3 = vmax.f32 %v927_v14, 0.0  ;;  %v883_v12 = vadd.f32 %v1487_v2, %v1943_v60  ;;  %v877_v19 = vpop.f32.mrb[29].mxu1 }
 0x1f1   :  { %v958_v20 = vmax.f32 %v926_v61, 0.0  ;;  %v878_v24 = vadd.f32 %v877_v19, %v1945_v52 }
 0x1f2   :  { %v929_v25 = vadd.f32 %v1935_v34, %v883_v12  ;;  %1516 = vmatpush3.bf16.xpose.msk.msra.mxu0 %vm1986_vm4, %v1952_v58 }
 0x1f3   :  { %v1529_v32 = vpack.c.bf16 %v959_v3, %v958_v20  ;;  %v928_v33 = vadd.f32 %v1935_v34, %v878_v24  ;;  %v1490_v27 = vpop.f32.mrb[30].mxu1  ;;  %1519 = vmatprep.subr.msk.bf16.mxu0 %vm1986_vm4, %v1517_v23 }
 0x1f4   :  { %v961_v35 = vmax.f32 %v929_v25, 0.0  ;;  %v893_v60 = vadd.f32 %v1490_v27, %v1959_v39  ;;  %v887_v36 = vpop.f32.mrb[31].mxu1  ;;  %v1148_v39 = vlaneseq }
 0x1f5   :  { %v960_v0 = vmax.f32 %v928_v33, 0.0  ;;  %v888_v52 = vadd.f32 %v887_v36, %v1961_v46  ;;  %v969_v46 = vpop.permute.xlu0 %968 }
 0x1f6   :  { %v931_v37 = vadd.f32 %v1935_v34, %v893_v60  ;;  %vm1162_vm5 = vcmp.lt.s32.totalorder %v1148_v39, 256 }
 0x1f7   :  { %v1535_v38 = vpack.c.bf16 %v961_v35, %v960_v0  ;;  %v930_v42 = vadd.f32 %v1935_v34, %v888_v52  ;;  %v1578_v34 = vmov 1966171168  }
 0x1f8   :  { %v963_v58 = vmax.f32 %v931_v37, 0.0 }
 0x1f9   :  { %v962_v43 = vmax.f32 %v930_v42, 0.0 }
 0x1fa   :  { %1522 = vmatpush3.bf16.xpose.msk.msra.mxu0 %vm1986_vm4, %v1956_v26  ;;  %v1146_v26 = vunpack.c.l.s4 %v1578_v34 }
 0x1fb   :  { %v1541_v30 = vpack.c.bf16 %v963_v58, %v962_v43  ;;  %1525 = vmatprep.subr.msk.bf16.mxu0 %vm1986_vm4, %v1523_v16 }
 0x202   :  { %1528 = vmatpush3.bf16.xpose.msk.msra.mxu0 %vm1986_vm4, %v1964_v47  ;;  %v1147_v47 = vunpack.c.0.s8 %v1146_v26 }
 0x203   :  { %1531 = vmatprep.subr.msk.bf16.mxu0 %vm1986_vm4, %v1529_v32 }
 0x20a   :  { %1534 = vmatpush3.bf16.xpose.msk.msra.mxu0 %vm1986_vm4, %v1968_v57  ;;  %v1149_v57 = vshrl.u32 %v1148_v39, 7 }
 0x20b   :  { %1537 = vmatprep.subr.msk.bf16.mxu0 %vm1986_vm4, %v1535_v38 }
 0x20c   :  { %v1150_v9 = vsub.s32 %v1147_v47, %v1149_v57 }
 0x212   :  { %1540 = vmatpush3.bf16.xpose.msk.msra.mxu0 %vm1986_vm4, %v1972_v8 }
 0x213   :  { %1543 = vmatprep.subr.msk.bf16.mxu0 %vm1986_vm4, %v1541_v30 }
 0x21a   :  { %1546 = vmatpush3.bf16.xpose.msk.msra.mxu0 %vm1986_vm4, %v1978_v15 }
 0x221   :  { %1382 = vmatmul.mubr.msk.f32.vlgmr.msra.gmra.mrb[32].mxu0 %vm971_vm3, %v1913_v21 }
 0x2f4   :  { %v1137_v6 = vpop.f32.mrb[32].mxu0 }
 0x2f5   :  { %v1138_v31 = vadd.f32 %v1137_v6, %v969_v46  ;;  %v1139_v48 = vpop.f32.mrb[33].mxu0 }
 0x2f6   :  { %v1140_v8 = vadd.f32 %v1139_v48, %v969_v46 }
 0x2f8   :  { %v1144_v45 = vcombine.low %v1138_v31, %v1140_v8 }
 0x2fa   :  { %v1151_v50 = vrot.slane %v1144_v45, %v1150_v9 }
 0x2fc   :  { %v1158_v15 = vrot.slane %v1151_v50, %v1150_v9 }
 0x2fe   :  { %1164 = vst.msk [vmem:[#allocation2] sm:$0x3] %vm1162_vm5, %v1158_v15 }
 0x2ff   :  { %1563 = shalt.err (!%p1560_p4)
}
 0x300   :  { %s1564_s13 = scalar_lea.hbm %s2071_s2, 32 }
 0x301   :  { %p1565_p5 = scmp.ne.s32.totalorder %s2071_s2, %s1564_s13  ;;  %p1568_p6 = scmp.lt.u32.totalorder %s1564_s13, %s2071_s2 }
 0x303   :  { %p1570_p7 = pnand %p1568_p6, %p1565_p5 }
 0x305   :  { %1573 = shalt.err (!%p1570_p7)
}
 0x306   :  { %1174 = dma.vmem_to_hbm [thread:$0]  %s1172_s9, 32, %s2071_s2, [#allocation3]  }
 0x307   :  { %1574 = dma.done.wait [#allocation3], 32  }
 0x308   :  { %1575 = vsyncadd [#allocation3], 4294967264 }
 0x309   :  { %1178 = vsyncpa [#allocation3], 1 }

</bundles_post_ra>
